<compile_context>
chip_gen: v6e
topology: v6e:2x2x1
jax: 0.10.0
libtpu: 0.0.40
codegen_flags: <defaults>
</compile_context>

<pallas_src>
import numpy as np
import jax
import jax.numpy as jnp
from jax.experimental import pallas as pl
from jax.experimental.pallas import tpu as pltpu


def _make_weighted_concat_kernel(channel_sizes):
    """Kernel: scale each input block by its (pre-normalized) weight and write it
    into its static channel slice of the output block."""
    offsets = np.cumsum([0] + list(channel_sizes)).tolist()
    n_in = len(channel_sizes)

    def kernel(w_ref, *refs):
        in_refs = refs[:n_in]
        o_ref = refs[n_in]
        for i in range(n_in):
            off, c = offsets[i], channel_sizes[i]
            # Static channel slice -> plain sublane-offset VMEM store; lane dim
            # (flattened H*W) is dense.  w_ref[i] is a pre-normalized f32 scalar
            # read from SMEM.
            o_ref[:, off:off + c, :] = (in_refs[i][...] * w_ref[i]).astype(o_ref.dtype)

    return kernel


def _largest_divisor_leq(n, cap):
    cap = max(1, min(n, int(cap)))
    for d in range(cap, 0, -1):
        if n % d == 0:
            return d
    return 1


def _pick_hw_tile(hw, bytes_per_lane, target_bytes, min_tile=512):
    """Spatial (lane) tile: a multiple of 128 with a `min_tile` floor (keeps each
    per-channel-row DMA burst multi-KiB), sized so the output block stays near
    `target_bytes`.  Only called when the full-hw block exceeds target_bytes.
    The grid uses cdiv, so hw need not be divisible by the tile (remainder block
    is padded; safe for this purely elementwise op)."""
    if hw < 128:
        return hw                      # must use the full (tiny) lane extent
    tile = (target_bytes // bytes_per_lane) // 128 * 128
    floor = min(min_tile, (hw // 128) * 128)
    tile = max(tile, floor, 128)
    return int(tile)


def weight_concat3(xs, w, epsilon=1e-4):
    """Pallas equivalent of Weight_Concat3.forward(xs) for NCHW tensors."""
    assert len(xs) == 3, "Weight_Concat3 takes exactly 3 inputs"
    n, _, h, wd = xs[0].shape
    dtype = xs[0].dtype
    for x in xs:
        assert x.shape[0] == n and x.shape[2] == h and x.shape[3] == wd
        assert x.dtype == dtype
    channel_sizes = [int(x.shape[1]) for x in xs]
    c_total = sum(channel_sizes)
    hw = h * wd
    itemsize = jnp.dtype(dtype).itemsize

    # Lane-dense layout: flatten H*W into the last (lane) dimension.
    xs3 = [x.reshape(n, c, hw) for x, c in zip(xs, channel_sizes)]

    # --- Generation-aware resource sizing -------------------------------------
    try:
        vmem_cap = int(pltpu.get_tpu_info().vmem_capacity_bytes)
    except Exception:  # conservative fallback (v7x-sized)
        vmem_cap = 64 * 1024 * 1024
    # Never request all of physical VMEM (v7x has only 64 MiB/TC).
    vmem_limit = min(vmem_cap * 3 // 4, 64 * 1024 * 1024)
    # Working set ~= 4-5x the output block (3 inputs + 1 output, double-buffered).
    target_bytes = min(16 * 1024 * 1024, vmem_limit // 5)

    # --- Grid / block selection -------------------------------------------------
    total_bytes = n * c_total * hw * itemsize
    min_steps = 4                      # engage v7x megacore (2 TCs) + pipelining
    bytes_per_lane = c_total * itemsize

    if total_bytes <= (1 << 20):
        # Tiny problem (e.g. the demo): one grid step, whole arrays as blocks.
        bn, hw_tile = n, hw
    else:
        per_sample = c_total * hw * itemsize
        if per_sample <= target_bytes:
            # Whole spatial extent per block; group samples but keep >= min_steps
            # grid steps so both v7x TensorCores get work.
            max_bn = min(target_bytes // per_sample, max(1, n // min_steps))
            bn = _largest_divisor_leq(n, max_bn)
            hw_tile = hw
        else:
            bn = 1
            hw_tile = _pick_hw_tile(hw, bytes_per_lane, target_bytes)
        # If the batch axis alone gives too few steps, split spatially further
        # (only while the tile stays a multiple of 128 and >= 512 lanes).
        steps = (n // bn) * pl.cdiv(hw, hw_tile)
        while (steps < min_steps and hw_tile >= 1024
               and (hw_tile // 2) % 128 == 0):
            hw_tile //= 2
            steps = (n // bn) * pl.cdiv(hw, hw_tile)

    grid = (n // bn, pl.cdiv(hw, hw_tile))

    # --- Normalize the 3-element weight once, outside the kernel ---------------
    w = jnp.asarray(w, jnp.float32)
    weight = w / (jnp.sum(w) + jnp.float32(epsilon))

    kernel = _make_weighted_concat_kernel(channel_sizes)

    in_specs = [pl.BlockSpec(memory_space=pltpu.MemorySpace.SMEM)] + [
        pl.BlockSpec((bn, c, hw_tile), lambda b, t: (b, 0, t))
        for c in channel_sizes
    ]
    out_spec = pl.BlockSpec((bn, c_total, hw_tile), lambda b, t: (b, 0, t))

    cost = pl.CostEstimate(
        flops=n * c_total * hw,                       # one multiply per element
        bytes_accessed=2 * n * c_total * hw * itemsize,
        transcendentals=0,
    )

    out3 = pl.pallas_call(
        kernel,
        out_shape=jax.ShapeDtypeStruct((n, c_total, hw), dtype),
        grid_spec=pltpu.PrefetchScalarGridSpec(
            num_scalar_prefetch=0,
            grid=grid,
            in_specs=in_specs,
            out_specs=out_spec,
        ),
        compiler_params=pltpu.CompilerParams(
            dimension_semantics=("parallel", "parallel"),
            vmem_limit_bytes=int(vmem_limit),
        ),
        cost_estimate=cost,
    )(weight, *xs3)

    return out3.reshape(n, c_total, h, wd)


if __name__ == "__main__":
    key = jax.random.PRNGKey(0)
    k1, k2, k3, kw = jax.random.split(key, 4)

    # Small shapes consistent with a feature-map concat: N=2, H=W=16,
    # heterogeneous channel counts 4 / 8 / 4.
    x1 = jax.random.normal(k1, (2, 4, 16, 16), dtype=jnp.float32)
    x2 = jax.random.normal(k2, (2, 8, 16, 16), dtype=jnp.float32)
    x3 = jax.random.normal(k3, (2, 4, 16, 16), dtype=jnp.float32)
    # The module initializes w to ones; use non-trivial values here so the
    # normalization path is actually exercised.
    w = jax.random.uniform(kw, (3,), dtype=jnp.float32, minval=0.5, maxval=1.5)

    out = weight_concat3([x1, x2, x3], w)
    out = jax.block_until_ready(out)

    # Pure-JAX reference matching the PyTorch forward.
    weight = w / (jnp.sum(w) + 1e-4)
    ref = jnp.concatenate([weight[0] * x1, weight[1] * x2, weight[2] * x3], axis=1)

    assert out.shape == ref.shape, (out.shape, ref.shape)
    np.testing.assert_allclose(np.asarray(out), np.asarray(ref),
                               rtol=1e-5, atol=1e-6)

    print("KERNEL_OK")
</pallas_src>

<mosaic_0001>
module attributes {stable_mosaic.version = 11 : i64} {
  func.func @kernel(%arg0: i32, %arg1: i32, %arg2: memref<3xf32, #tpu.memory_space<smem>>, %arg3: memref<2x4x256xf32, #tpu.memory_space<vmem>>, %arg4: memref<2x8x256xf32, #tpu.memory_space<vmem>>, %arg5: memref<2x4x256xf32, #tpu.memory_space<vmem>>, %arg6: memref<2x16x256xf32, #tpu.memory_space<vmem>>) attributes {dimension_semantics = [#tpu.dimension_semantics<parallel>, #tpu.dimension_semantics<parallel>], iteration_bounds = array<i64: 1, 1>, scalar_prefetch = 0 : i64, scratch_operands = 0 : i64, tpu.core_type = #tpu.core_type<tc>, window_params = [{transform_indices = @transform_0, window_bounds = array<i64: 3>}, {transform_indices = @transform_1, window_bounds = array<i64: 2, 4, 256>}, {transform_indices = @transform_2, window_bounds = array<i64: 2, 8, 256>}, {transform_indices = @transform_3, window_bounds = array<i64: 2, 4, 256>}, {transform_indices = @transform_4, window_bounds = array<i64: 2, 16, 256>}]} {
    %c0 = arith.constant 0 : index
    %c0_0 = arith.constant 0 : index
    %c0_1 = arith.constant 0 : index
    %0 = vector.load %arg3[%c0, %c0_0, %c0_1] : memref<2x4x256xf32, #tpu.memory_space<vmem>>, vector<2x4x256xf32>
    %c0_2 = arith.constant 0 : index
    %1 = memref.load %arg2[%c0_2] : memref<3xf32, #tpu.memory_space<smem>>
    %2 = vector.broadcast %1 : f32 to vector<2x4x256xf32>
    %3 = arith.mulf %0, %2 : vector<2x4x256xf32>
    %c0_3 = arith.constant 0 : index
    %c0_4 = arith.constant 0 : index
    %c0_5 = arith.constant 0 : index
    %4 = vector.load %arg6[%c0_3, %c0_4, %c0_5] : memref<2x16x256xf32, #tpu.memory_space<vmem>>, vector<2x4x256xf32>
    tpu.vector_store %arg6[%c0_3, %c0_4, %c0_5], %3 {strides = array<i32>} : memref<2x16x256xf32, #tpu.memory_space<vmem>>, vector<2x4x256xf32>,
    %c0_6 = arith.constant 0 : index
    %c0_7 = arith.constant 0 : index
    %c0_8 = arith.constant 0 : index
    %5 = vector.load %arg4[%c0_6, %c0_7, %c0_8] : memref<2x8x256xf32, #tpu.memory_space<vmem>>, vector<2x8x256xf32>
    %c1 = arith.constant 1 : index
    %6 = memref.load %arg2[%c1] : memref<3xf32, #tpu.memory_space<smem>>
    %7 = vector.broadcast %6 : f32 to vector<2x8x256xf32>
    %8 = arith.mulf %5, %7 : vector<2x8x256xf32>
    %c0_9 = arith.constant 0 : index
    %c4 = arith.constant 4 : index
    %c0_10 = arith.constant 0 : index
    %9 = vector.load %arg6[%c0_9, %c4, %c0_10] : memref<2x16x256xf32, #tpu.memory_space<vmem>>, vector<2x8x256xf32>
    tpu.vector_store %arg6[%c0_9, %c4, %c0_10], %8 {strides = array<i32>} : memref<2x16x256xf32, #tpu.memory_space<vmem>>, vector<2x8x256xf32>,
    %c0_11 = arith.constant 0 : index
    %c0_12 = arith.constant 0 : index
    %c0_13 = arith.constant 0 : index
    %10 = vector.load %arg5[%c0_11, %c0_12, %c0_13] : memref<2x4x256xf32, #tpu.memory_space<vmem>>, vector<2x4x256xf32>
    %c2 = arith.constant 2 : index
    %11 = memref.load %arg2[%c2] : memref<3xf32, #tpu.memory_space<smem>>
    %12 = vector.broadcast %11 : f32 to vector<2x4x256xf32>
    %13 = arith.mulf %10, %12 : vector<2x4x256xf32>
    %c0_14 = arith.constant 0 : index
    %c12 = arith.constant 12 : index
    %c0_15 = arith.constant 0 : index
    %14 = vector.load %arg6[%c0_14, %c12, %c0_15] : memref<2x16x256xf32, #tpu.memory_space<vmem>>, vector<2x4x256xf32>
    tpu.vector_store %arg6[%c0_14, %c12, %c0_15], %13 {strides = array<i32>} : memref<2x16x256xf32, #tpu.memory_space<vmem>>, vector<2x4x256xf32>,
    return
  }
  func.func @transform_0(%arg0: i32, %arg1: i32) -> i32 {
    %c0_i32 = arith.constant 0 : i32
    %c0_i32_0 = arith.constant 0 : i32
    return %c0_i32 : i32
  }
  func.func @transform_1(%arg0: i32, %arg1: i32) -> (i32, i32, i32) {
    %c0_i32 = arith.constant 0 : i32
    %c0_i32_0 = arith.constant 0 : i32
    return %arg0, %c0_i32, %arg1 : i32, i32, i32
  }
  func.func @transform_2(%arg0: i32, %arg1: i32) -> (i32, i32, i32) {
    %c0_i32 = arith.constant 0 : i32
    %c0_i32_0 = arith.constant 0 : i32
    return %arg0, %c0_i32, %arg1 : i32, i32, i32
  }
  func.func @transform_3(%arg0: i32, %arg1: i32) -> (i32, i32, i32) {
    %c0_i32 = arith.constant 0 : i32
    %c0_i32_0 = arith.constant 0 : i32
    return %arg0, %c0_i32, %arg1 : i32, i32, i32
  }
  func.func @transform_4(%arg0: i32, %arg1: i32) -> (i32, i32, i32) {
    %c0_i32 = arith.constant 0 : i32
    %c0_i32_0 = arith.constant 0 : i32
    return %arg0, %c0_i32, %arg1 : i32, i32, i32
  }
}

</mosaic_0001>

<bundles_post_ra>
// kernel: tpu_custom_call.1
= control target key start
LH: loop header
LB: loop body
LE: loop exit
PB: predicated region body
PF: predicated region fallthrough
CT: control target
= control target key end

     0   :  { %9 = vsyncpa [#allocation5], 0  ;;  %s316_s0 = inlined_call_operand.hbm [shape: f32[3], index: 0, kind: input, shape index: {}]   ;;  %s317_s1 = inlined_call_operand.hbm [shape: f32[2,4,256], index: 1, kind: input, shape index: {}]   ;;  %s318_s2 = inlined_call_operand.hbm [shape: f32[2,8,256], index: 2, kind: input, shape index: {}]   ;;  %s319_s3 = inlined_call_operand.hbm [shape: f32[2,4,256], index: 3, kind: input, shape index: {}]   ;;  %s320_s4 = inlined_call_operand.hbm [shape: f32[2,16,256], index: 4, kind: output, shape index: {}]  }
   0x1   :  { %10 = vsyncpa [#allocation3], 0 }
   0x2   :  { %11 = vsyncpa [#allocation8], 0 }
   0x3   :  { %12 = vsyncpa [#allocation4], 0  ;;  %s258_s15 = smov [#allocation7]  }
   0x4   :  { %s38_s16 = sshll.u32 %s258_s15, 4  ;;  %s39_s16 = int_to_ptr.vmem [resolvable:$true] %s38_s16 }
   0x5   :  { %s170_s17 = scalar_lea.vmem %s39_s16, 512  ;;  %p175_p1 = scmp.lt.s32.totalorder %s39_s16, %s39_s16 }
   0x6   :  { %p171_p0 = scmp.ne.s32.totalorder %s39_s16, %s170_s17  ;;  %p176_p2 = scmp.lt.s32.totalorder %s170_s17, %s170_s17 }
   0x8   :  { %p177_p3 = por %p176_p2, %p175_p1 }
   0xa   :  { %p178_p4 = pnand %p177_p3, %p171_p0 }
   0xc   :  { %181 = shalt.err (!%p178_p4)
}
   0xd   :  { %s259_s18 = smov 256   ;;  %s260_s19 = smov 16  }
   0xe   :  { %44 = dma.hbm_to_vmem [thread:$0]  %s318_s2, 512, %s39_s16, [#allocation8], %s259_s18, %s259_s18, %s260_s19  }
   0xf   :  { %s261_s22 = smov [#allocation2]   ;;  %s262_s25 = smov [#allocation6]  }
  0x10   :  { %20 = dma.hbm_to_smem %s316_s0, 16, %s261_s22, [#allocation5]  }
  0x11   :  { %s26_s26 = sshll.u32 %s262_s25, 4  ;;  %s27_s26 = int_to_ptr.vmem [resolvable:$true] %s26_s26 }
  0x12   :  { %s198_s27 = scalar_lea.vmem %s27_s26, 256  ;;  %p203_p6 = scmp.lt.s32.totalorder %s27_s26, %s27_s26 }
  0x13   :  { %p199_p5 = scmp.ne.s32.totalorder %s27_s26, %s198_s27  ;;  %p204_p7 = scmp.lt.s32.totalorder %s198_s27, %s198_s27 }
  0x15   :  { %p205_p8 = por %p204_p7, %p203_p6 }
  0x17   :  { %p206_p9 = pnand %p205_p8, %p199_p5 }
  0x19   :  { %209 = shalt.err (!%p206_p9)
}
  0x1a   :  { %s263_s28 = smov 128   ;;  %s264_s29 = smov 8  }
  0x1b   :  { %32 = dma.hbm_to_vmem [thread:$0]  %s317_s1, 256, %s27_s26, [#allocation3], %s263_s28, %s263_s28, %s264_s29  }
  0x1c   :  { %s265_s2 = smov [#allocation9]  }
  0x1d   :  { %s50_s6 = sshll.u32 %s265_s2, 4  ;;  %s51_s6 = int_to_ptr.vmem [resolvable:$true] %s50_s6 }
  0x1e   :  { %s218_s0 = scalar_lea.vmem %s51_s6, 256  ;;  %p223_p11 = scmp.lt.s32.totalorder %s51_s6, %s51_s6 }
  0x1f   :  { %p219_p10 = scmp.ne.s32.totalorder %s51_s6, %s218_s0  ;;  %p224_p12 = scmp.lt.s32.totalorder %s218_s0, %s218_s0 }
  0x21   :  { %p225_p13 = por %p224_p12, %p223_p11 }
  0x23   :  { %p226_p0 = pnand %p225_p13, %p219_p10 }
  0x25   :  { %229 = shalt.err (!%p226_p0)
}
  0x26   :  { %56 = dma.hbm_to_vmem [thread:$0]  %s319_s3, 256, %s51_s6, [#allocation8], %s263_s28, %s263_s28, %s264_s29  }
  0x27   :  { %250 = dma.done.wait [#allocation5], 16  }
  0x28   :  { %251 = vsyncadd [#allocation5], 4294967280 }
  0x29   :  { %252 = dma.done.wait [#allocation3], 256  }
  0x2a   :  { %253 = vsyncadd [#allocation3], 4294967040 }
  0x2b   :  { %254 = dma.done.wait [#allocation8], 768  }
  0x2c   :  { %255 = vsyncadd [#allocation8], 4294966528 }
  0x2d   :  { %69 = sfence }
  0x2e   :  { %s72_s1 = sld [smem:[#allocation2]]  ;;  %v70_v0 = vld [vmem:[#allocation6] sm:$0xff]  ;;  %v71_v1 = vld [vmem:[#allocation6 + $0x8] sm:$0xff]  ;;  %v86_v2 = vld [vmem:[#allocation7] sm:$0xff]  ;;  %s266_s3 = smov [#allocation10]  }
  0x2f   :  { %s151_s9 = sld [smem:[#allocation2 + $0x1]]  ;;  %v87_v3 = vld [vmem:[#allocation7 + $0x8] sm:$0xff]  ;;  %v88_v4 = vld [vmem:[#allocation7 + $0x10] sm:$0xff]  ;;  %v89_v5 = vld [vmem:[#allocation7 + $0x18] sm:$0xff]  ;;  %s137_s11 = sshll.u32 %s266_s3, 4  ;;  %s138_s11 = int_to_ptr.vmem [resolvable:$true] %s137_s11 }
  0x30   :  { %s307_s10 = sld [smem:[#allocation2 + $0x2]]  ;;  %v116_v14 = vld [vmem:[#allocation9] sm:$0xff]  ;;  %v117_v15 = vld [vmem:[#allocation9 + $0x8] sm:$0xff]  ;;  %s230_s12 = scalar_lea.vmem %s138_s11, 1024 }
  0x31   :  { %p231_p1 = scmp.ne.s32.totalorder %s138_s11, %s230_s12  ;;  %p235_p2 = scmp.lt.s32.totalorder %s138_s11, %s138_s11 }
  0x32   :  { %p236_p3 = scmp.lt.s32.totalorder %s230_s12, %s230_s12 }
  0x34   :  { %v73_v6 = vstv %s72_s1  ;;  %p237_p4 = por %p236_p3, %p235_p2 }
  0x35   :  { %v74_v7 = vmul.f32 %v73_v6, %v70_v0  ;;  %v75_v8 = vmul.f32 %v73_v6, %v71_v1  ;;  %v91_v9 = vstv %s151_s9 }
  0x36   :  { %v92_v10 = vmul.f32 %v91_v9, %v86_v2  ;;  %v93_v11 = vmul.f32 %v91_v9, %v87_v3  ;;  %v94_v12 = vmul.f32 %v91_v9, %v88_v4  ;;  %v95_v13 = vmul.f32 %v91_v9, %v89_v5  ;;  %p238_p5 = pnand %p237_p4, %p231_p1 }
  0x37   :  { %82 = vst [vmem:[#allocation10] sm:$0xf] %v74_v7  ;;  %v78_v16 = vcombine.high %v74_v7, %v74_v7  ;;  %84 = vst [vmem:[#allocation10 + $0x20] sm:$0xf] %v75_v8  ;;  %v79_v17 = vcombine.high %v75_v8, %v75_v8  ;;  %v119_v18 = vstv %s307_s10 }
  0x38   :  { %v100_v19 = vrot.slane %v92_v10, 4  ;;  %v101_v20 = vrot.slane %v93_v11, 4  ;;  %v102_v21 = vrot.slane %v94_v12, 4  ;;  %v103_v22 = vrot.slane %v95_v13, 4 }
  0x39   :  { %83 = vst [vmem:[#allocation10 + $0x8] sm:$0xf] %v78_v16  ;;  %85 = vst [vmem:[#allocation10 + $0x28] sm:$0xf] %v79_v17  ;;  %v120_v23 = vmul.f32 %v119_v18, %v116_v14  ;;  %v121_v24 = vmul.f32 %v119_v18, %v117_v15 }
  0x3a   :  { %108 = vst [vmem:[#allocation10 + $0x10] ss:$-12 sps:$4 sm:$0xff] %v100_v19   ;;  %109 = vst [vmem:[#allocation10 + $0x18] ss:$-12 sps:$4 sm:$0xff] %v101_v20  }
  0x3b   :  { %112 = vst [vmem:[#allocation10 + $0x30] ss:$-12 sps:$4 sm:$0xff] %v102_v21   ;;  %113 = vst [vmem:[#allocation10 + $0x38] ss:$-12 sps:$4 sm:$0xff] %v103_v22   ;;  %v124_v25 = vcombine.low %v120_v23, %v120_v23  ;;  %v125_v26 = vcombine.low %v121_v24, %v121_v24 }
  0x3c   :  { %129 = vst [vmem:[#allocation10 + $0x18] sm:$0xf0] %v120_v23  ;;  %131 = vst [vmem:[#allocation10 + $0x38] sm:$0xf0] %v121_v24 }
  0x3d   :  { %128 = vst [vmem:[#allocation10 + $0x10] sm:$0xf0] %v124_v25  ;;  %130 = vst [vmem:[#allocation10 + $0x30] sm:$0xf0] %v125_v26 }
  0x3e   :  { %241 = shalt.err (!%p238_p5)
}
  0x3f   :  { %143 = dma.vmem_to_hbm [thread:$0]  %s138_s11, 1024, %s320_s4, [#allocation4], %s259_s18, %s259_s18, %s260_s19  }
  0x40   :  { %256 = dma.done.wait [#allocation4], 1024  }
  0x41   :  { %257 = vsyncadd [#allocation4], 4294966272 }
  0x42   :  { %147 = vsyncpa [#allocation3], 1 }
  0x43   :  { %148 = vsyncpa [#allocation8], 1 }
  0x44   :  { %149 = vsyncpa [#allocation4], 1 }
  0x45   :  { %150 = vsyncpa [#allocation5], 1 }

</bundles_post_ra>
